<compile_context>
chip_gen: v6e
topology: v6e:2x2x1
jax: 0.10.0
libtpu: 0.0.40
codegen_flags: <defaults>
</compile_context>

<pallas_src>
import functools

import jax
import jax.numpy as jnp
from jax import lax
from jax.experimental import pallas as pl


LANE = 128
SUBLANE = 8


# ----------------------------------------------------------------------------
# Fused Pallas kernel: conv1 -> ReLU -> conv2 -> ReLU -> conv3 -> fc -> softmax
# ----------------------------------------------------------------------------
def sage_fused_kernel(a_ref, x_ref,
                      w1_ref, b1_ref, w2_ref, b2_ref, w3_ref, b3_ref,
                      wf_ref, bf_ref, o_ref, *, num_classes):
    """All refs are lane-padded to a common feature width F (multiple of 128).

    a_ref : [N, N]    row-normalized adjacency (mean aggregation matrix)
    x_ref : [N, F]    node features (real columns followed by zero padding)
    w*_ref: [2F, F]   concat([lin_l_weight; lin_r_weight]) per SAGEConv layer
    b*_ref: [1, F]    lin_l bias (zero in padded columns)
    wf_ref: [F, F]    fc weight (zero in padded rows/columns)
    bf_ref: [1, F]    fc bias
    o_ref : [N, F]    softmax probabilities (real classes in the first
                      `num_classes` columns, zeros elsewhere after slicing)
    """
    a = a_ref[...]

    def sage_layer(h, w_ref, b_ref, apply_relu):
        # mean aggregation via dense row-normalized adjacency.
        agg = jnp.dot(a, h, preferred_element_type=jnp.float32)
        # merged lin_l / lin_r: one MXU matmul with doubled contraction dim.
        cat = jnp.concatenate([agg, h], axis=-1)                     # [N, 2F]
        out = jnp.dot(cat, w_ref[...], preferred_element_type=jnp.float32)
        out = out + b_ref[...]
        # F.normalize(out, p=2, dim=-1): out / max(||out||, 1e-12)
        #   == out * rsqrt(max(sumsq, 1e-24))  (EUP rsqrt, no VALU divide)
        sumsq = jnp.sum(out * out, axis=-1, keepdims=True)
        out = out * lax.rsqrt(jnp.maximum(sumsq, 1e-24))
        if apply_relu:
            # transition = ReLU + Dropout(p); Dropout is identity at inference.
            # TODO(synk): training-mode dropout (random mask) not implemented.
            out = jnp.maximum(out, 0.0)
        return out

    h = sage_layer(x_ref[...], w1_ref, b1_ref, apply_relu=True)
    h = sage_layer(h, w2_ref, b2_ref, apply_relu=True)
    h = sage_layer(h, w3_ref, b3_ref, apply_relu=False)

    # Final Linear + softmax over the real classes only (mask padded lanes).
    logits = jnp.dot(h, wf_ref[...], preferred_element_type=jnp.float32)
    logits = logits + bf_ref[...]
    col = lax.broadcasted_iota(jnp.int32, logits.shape, 1)
    logits = jnp.where(col < num_classes, logits, -1e30)
    m = jnp.max(logits, axis=-1, keepdims=True)
    e = jnp.exp(logits - m)
    denom = jnp.sum(e, axis=-1, keepdims=True)
    o_ref[...] = (e * pl.reciprocal(denom, approx=True)).astype(o_ref.dtype)


# ----------------------------------------------------------------------------
# Wrapper: pad to lane-dense shapes, merge lin_l/lin_r weights, single call
# ----------------------------------------------------------------------------
def _round_up(v, m):
    return (v + m - 1) // m * m


def _pad2d(x, rows, cols):
    return jnp.pad(x, ((0, rows - x.shape[0]), (0, cols - x.shape[1])))


def _full_spec(shape):
    return pl.BlockSpec(shape, lambda: tuple(0 for _ in shape))


def sage_forward(params, x, adj_mean, *, out_channels):
    n, fin = x.shape
    hidden = params["conv1_wl"].shape[1]

    n_p = _round_up(max(n, SUBLANE), SUBLANE)
    f_p = _round_up(max(fin, hidden, out_channels, LANE), LANE)

    a_p = _pad2d(adj_mean, n_p, n_p)
    x_p = _pad2d(x, n_p, f_p)

    def cat_w(wl, wr):
        # rows [0:f_p) multiply the aggregated neighbor features,
        # rows [f_p:2*f_p) multiply the root/self features (no bias).
        return jnp.concatenate([_pad2d(wl, f_p, f_p), _pad2d(wr, f_p, f_p)], axis=0)

    w1 = cat_w(params["conv1_wl"], params["conv1_wr"])
    w2 = cat_w(params["conv2_wl"], params["conv2_wr"])
    w3 = cat_w(params["conv3_wl"], params["conv3_wr"])
    b1 = _pad2d(params["conv1_bl"], 1, f_p)
    b2 = _pad2d(params["conv2_bl"], 1, f_p)
    b3 = _pad2d(params["conv3_bl"], 1, f_p)
    wf = _pad2d(params["fc_w"], f_p, f_p)
    bf = _pad2d(params["fc_b"], 1, f_p)

    operands = (a_p, x_p, w1, b1, w2, b2, w3, b3, wf, bf)
    kernel = functools.partial(sage_fused_kernel, num_classes=out_channels)

    out_p = pl.pallas_call(
        kernel,
        out_shape=jax.ShapeDtypeStruct((n_p, f_p), jnp.float32),
        in_specs=[_full_spec(op.shape) for op in operands],
        out_specs=_full_spec((n_p, f_p)),
    )(*operands)

    return out_p[:n, :out_channels]


# ----------------------------------------------------------------------------
# Model glue (plain JAX): adjacency construction + parameter init + reference
# ----------------------------------------------------------------------------
def build_mean_adj(edge_index, num_nodes):
    """Dense row-normalized adjacency: A[t, s] = 1/in_deg(t) for edge s->t."""
    src, tgt = edge_index[0], edge_index[1]
    a = jnp.zeros((num_nodes, num_nodes), jnp.float32).at[tgt, src].add(1.0)
    deg = jnp.sum(a, axis=-1, keepdims=True)
    return a / jnp.maximum(deg, 1.0)  # rows with deg 0 stay all-zero (mean of empty = 0)


def xavier_uniform(key, fan_in, fan_out):
    bound = (6.0 / (fan_in + fan_out)) ** 0.5
    return jax.random.uniform(key, (fan_in, fan_out), jnp.float32, -bound, bound)


def init_params(key, in_channels, hidden_channels, out_channels):
    ks = jax.random.split(key, 7)
    params = {}
    dims = [(in_channels, hidden_channels),
            (hidden_channels, hidden_channels),
            (hidden_channels, hidden_channels)]
    for i, (fi, fo) in enumerate(dims, start=1):
        params[f"conv{i}_wl"] = xavier_uniform(ks[2 * (i - 1)], fi, fo)
        params[f"conv{i}_bl"] = jnp.zeros((1, fo), jnp.float32)
        params[f"conv{i}_wr"] = xavier_uniform(ks[2 * (i - 1) + 1], fi, fo)
    params["fc_w"] = xavier_uniform(ks[6], hidden_channels, out_channels)
    params["fc_b"] = jnp.zeros((1, out_channels), jnp.float32)
    return params


def sage_reference(params, x, a):
    """Pure-JAX reference of the same forward pass (for correctness check)."""
    def layer(h, wl, bl, wr, relu):
        out = (a @ h) @ wl + bl + h @ wr
        norm = jnp.sqrt(jnp.sum(out * out, axis=-1, keepdims=True))
        out = out / jnp.maximum(norm, 1e-12)
        return jnp.maximum(out, 0.0) if relu else out

    h = layer(x, params["conv1_wl"], params["conv1_bl"], params["conv1_wr"], True)
    h = layer(h, params["conv2_wl"], params["conv2_bl"], params["conv2_wr"], True)
    h = layer(h, params["conv3_wl"], params["conv3_bl"], params["conv3_wr"], False)
    logits = h @ params["fc_w"] + params["fc_b"]
    return jax.nn.softmax(logits, axis=-1)


if __name__ == "__main__":
    key = jax.random.PRNGKey(0)
    k_x, k_e, k_p = jax.random.split(key, 3)

    num_nodes = 16
    in_channels = 8
    hidden_channels = 32
    out_channels = 4
    num_edges = 48

    # Node features [N, Fin]
    x = jax.random.normal(k_x, (num_nodes, in_channels), jnp.float32)

    # Deterministic random edge_index [2, E] (source, target)
    edge_index = jax.random.randint(k_e, (2, num_edges), 0, num_nodes, jnp.int32)
    adj_mean = build_mean_adj(edge_index, num_nodes)

    params = init_params(k_p, in_channels, hidden_channels, out_channels)

    out = sage_forward(params, x, adj_mean, out_channels=out_channels)
    out = jax.block_until_ready(out)

    assert out.shape == (num_nodes, out_channels)
    # softmax rows sum to ~1 (approx-reciprocal -> loose tolerance)
    assert bool(jnp.all(jnp.abs(jnp.sum(out, axis=-1) - 1.0) < 5e-3))
    # match the pure-JAX reference of the same forward pass
    ref = sage_reference(params, x, adj_mean)
    assert bool(jnp.allclose(out, ref, atol=5e-3, rtol=5e-3))
    print("KERNEL_OK")
</pallas_src>

<mosaic_0001>
module attributes {stable_mosaic.version = 11 : i64} {
  func.func @sage_fused_kernel(%arg0: memref<16x16xf32, #tpu.memory_space<vmem>>, %arg1: memref<16x128xf32, #tpu.memory_space<vmem>>, %arg2: memref<256x128xf32, #tpu.memory_space<vmem>>, %arg3: memref<1x128xf32, #tpu.memory_space<vmem>>, %arg4: memref<256x128xf32, #tpu.memory_space<vmem>>, %arg5: memref<1x128xf32, #tpu.memory_space<vmem>>, %arg6: memref<256x128xf32, #tpu.memory_space<vmem>>, %arg7: memref<1x128xf32, #tpu.memory_space<vmem>>, %arg8: memref<128x128xf32, #tpu.memory_space<vmem>>, %arg9: memref<1x128xf32, #tpu.memory_space<vmem>>, %arg10: memref<16x128xf32, #tpu.memory_space<vmem>>) attributes {dimension_semantics = [], scalar_prefetch = 0 : i64, scratch_operands = 0 : i64, tpu.core_type = #tpu.core_type<tc>} {
    %c0 = arith.constant 0 : index
    %c0_0 = arith.constant 0 : index
    %0 = vector.load %arg0[%c0, %c0_0] : memref<16x16xf32, #tpu.memory_space<vmem>>, vector<16x16xf32>
    %c0_1 = arith.constant 0 : index
    %c0_2 = arith.constant 0 : index
    %1 = vector.load %arg1[%c0_1, %c0_2] : memref<16x128xf32, #tpu.memory_space<vmem>>, vector<16x128xf32>
    %cst = arith.constant dense<0.000000e+00> : vector<16x128xf32>
    %2 = tpu.matmul %0, %1, %cst {dimension_numbers = #tpu.dot_dimension_numbers<[1], [0], [0], [1], [0, 0, 1, 1], [], []>} : vector<16x16xf32>, vector<16x128xf32>, vector<16x128xf32> -> vector<16x128xf32>
    %3 = tpu.concatenate %2, %1 in 1 : vector<16x128xf32>, vector<16x128xf32> -> vector<16x256xf32>
    %c0_3 = arith.constant 0 : index
    %c0_4 = arith.constant 0 : index
    %4 = vector.load %arg2[%c0_3, %c0_4] : memref<256x128xf32, #tpu.memory_space<vmem>>, vector<256x128xf32>
    %cst_5 = arith.constant dense<0.000000e+00> : vector<16x128xf32>
    %5 = tpu.matmul %3, %4, %cst_5 {dimension_numbers = #tpu.dot_dimension_numbers<[1], [0], [0], [1], [0, 0, 1, 1], [], []>} : vector<16x256xf32>, vector<256x128xf32>, vector<16x128xf32> -> vector<16x128xf32>
    %c0_6 = arith.constant 0 : index
    %c0_7 = arith.constant 0 : index
    %6 = vector.load %arg3[%c0_6, %c0_7] : memref<1x128xf32, #tpu.memory_space<vmem>>, vector<1x128xf32>
    %7 = vector.broadcast %6 : vector<1x128xf32> to vector<16x128xf32>
    %8 = arith.addf %5, %7 : vector<16x128xf32>
    %9 = arith.mulf %8, %8 : vector<16x128xf32>
    %cst_8 = arith.constant dense<0.000000e+00> : vector<16xf32>
    %10 = vector.multi_reduction <add>, %9, %cst_8 [1] : vector<16x128xf32> to vector<16xf32>
    %11 = vector.shape_cast %10 : vector<16xf32> to vector<16x1xf32>
    %cst_9 = arith.constant 1.000000e-24 : f32
    %12 = vector.broadcast %cst_9 : f32 to vector<16x1xf32>
    %13 = arith.maximumf %11, %12 : vector<16x1xf32>
    %14 = math.rsqrt %13 : vector<16x1xf32>
    %15 = vector.broadcast %14 : vector<16x1xf32> to vector<16x128xf32>
    %16 = arith.mulf %8, %15 : vector<16x128xf32>
    %cst_10 = arith.constant 0.000000e+00 : f32
    %17 = vector.broadcast %cst_10 : f32 to vector<16x128xf32>
    %18 = arith.maximumf %16, %17 : vector<16x128xf32>
    %cst_11 = arith.constant dense<0.000000e+00> : vector<16x128xf32>
    %19 = tpu.matmul %0, %18, %cst_11 {dimension_numbers = #tpu.dot_dimension_numbers<[1], [0], [0], [1], [0, 0, 1, 1], [], []>} : vector<16x16xf32>, vector<16x128xf32>, vector<16x128xf32> -> vector<16x128xf32>
    %20 = tpu.concatenate %19, %18 in 1 : vector<16x128xf32>, vector<16x128xf32> -> vector<16x256xf32>
    %c0_12 = arith.constant 0 : index
    %c0_13 = arith.constant 0 : index
    %21 = vector.load %arg4[%c0_12, %c0_13] : memref<256x128xf32, #tpu.memory_space<vmem>>, vector<256x128xf32>
    %cst_14 = arith.constant dense<0.000000e+00> : vector<16x128xf32>
    %22 = tpu.matmul %20, %21, %cst_14 {dimension_numbers = #tpu.dot_dimension_numbers<[1], [0], [0], [1], [0, 0, 1, 1], [], []>} : vector<16x256xf32>, vector<256x128xf32>, vector<16x128xf32> -> vector<16x128xf32>
    %c0_15 = arith.constant 0 : index
    %c0_16 = arith.constant 0 : index
    %23 = vector.load %arg5[%c0_15, %c0_16] : memref<1x128xf32, #tpu.memory_space<vmem>>, vector<1x128xf32>
    %24 = vector.broadcast %23 : vector<1x128xf32> to vector<16x128xf32>
    %25 = arith.addf %22, %24 : vector<16x128xf32>
    %26 = arith.mulf %25, %25 : vector<16x128xf32>
    %cst_17 = arith.constant dense<0.000000e+00> : vector<16xf32>
    %27 = vector.multi_reduction <add>, %26, %cst_17 [1] : vector<16x128xf32> to vector<16xf32>
    %28 = vector.shape_cast %27 : vector<16xf32> to vector<16x1xf32>
    %cst_18 = arith.constant 1.000000e-24 : f32
    %29 = vector.broadcast %cst_18 : f32 to vector<16x1xf32>
    %30 = arith.maximumf %28, %29 : vector<16x1xf32>
    %31 = math.rsqrt %30 : vector<16x1xf32>
    %32 = vector.broadcast %31 : vector<16x1xf32> to vector<16x128xf32>
    %33 = arith.mulf %25, %32 : vector<16x128xf32>
    %cst_19 = arith.constant 0.000000e+00 : f32
    %34 = vector.broadcast %cst_19 : f32 to vector<16x128xf32>
    %35 = arith.maximumf %33, %34 : vector<16x128xf32>
    %cst_20 = arith.constant dense<0.000000e+00> : vector<16x128xf32>
    %36 = tpu.matmul %0, %35, %cst_20 {dimension_numbers = #tpu.dot_dimension_numbers<[1], [0], [0], [1], [0, 0, 1, 1], [], []>} : vector<16x16xf32>, vector<16x128xf32>, vector<16x128xf32> -> vector<16x128xf32>
    %37 = tpu.concatenate %36, %35 in 1 : vector<16x128xf32>, vector<16x128xf32> -> vector<16x256xf32>
    %c0_21 = arith.constant 0 : index
    %c0_22 = arith.constant 0 : index
    %38 = vector.load %arg6[%c0_21, %c0_22] : memref<256x128xf32, #tpu.memory_space<vmem>>, vector<256x128xf32>
    %cst_23 = arith.constant dense<0.000000e+00> : vector<16x128xf32>
    %39 = tpu.matmul %37, %38, %cst_23 {dimension_numbers = #tpu.dot_dimension_numbers<[1], [0], [0], [1], [0, 0, 1, 1], [], []>} : vector<16x256xf32>, vector<256x128xf32>, vector<16x128xf32> -> vector<16x128xf32>
    %c0_24 = arith.constant 0 : index
    %c0_25 = arith.constant 0 : index
    %40 = vector.load %arg7[%c0_24, %c0_25] : memref<1x128xf32, #tpu.memory_space<vmem>>, vector<1x128xf32>
    %41 = vector.broadcast %40 : vector<1x128xf32> to vector<16x128xf32>
    %42 = arith.addf %39, %41 : vector<16x128xf32>
    %43 = arith.mulf %42, %42 : vector<16x128xf32>
    %cst_26 = arith.constant dense<0.000000e+00> : vector<16xf32>
    %44 = vector.multi_reduction <add>, %43, %cst_26 [1] : vector<16x128xf32> to vector<16xf32>
    %45 = vector.shape_cast %44 : vector<16xf32> to vector<16x1xf32>
    %cst_27 = arith.constant 1.000000e-24 : f32
    %46 = vector.broadcast %cst_27 : f32 to vector<16x1xf32>
    %47 = arith.maximumf %45, %46 : vector<16x1xf32>
    %48 = math.rsqrt %47 : vector<16x1xf32>
    %49 = vector.broadcast %48 : vector<16x1xf32> to vector<16x128xf32>
    %50 = arith.mulf %42, %49 : vector<16x128xf32>
    %c0_28 = arith.constant 0 : index
    %c0_29 = arith.constant 0 : index
    %51 = vector.load %arg8[%c0_28, %c0_29] : memref<128x128xf32, #tpu.memory_space<vmem>>, vector<128x128xf32>
    %cst_30 = arith.constant dense<0.000000e+00> : vector<16x128xf32>
    %52 = tpu.matmul %50, %51, %cst_30 {dimension_numbers = #tpu.dot_dimension_numbers<[1], [0], [0], [1], [0, 0, 1, 1], [], []>} : vector<16x128xf32>, vector<128x128xf32>, vector<16x128xf32> -> vector<16x128xf32>
    %c0_31 = arith.constant 0 : index
    %c0_32 = arith.constant 0 : index
    %53 = vector.load %arg9[%c0_31, %c0_32] : memref<1x128xf32, #tpu.memory_space<vmem>>, vector<1x128xf32>
    %54 = vector.broadcast %53 : vector<1x128xf32> to vector<16x128xf32>
    %55 = arith.addf %52, %54 : vector<16x128xf32>
    %56 = tpu.iota {dimensions = array<i32: 1>} : vector<16x128xi32>
    %c4_i32 = arith.constant 4 : i32
    %57 = vector.broadcast %c4_i32 : i32 to vector<16x128xi32>
    %58 = arith.cmpi slt, %56, %57 : vector<16x128xi32>
    %cst_33 = arith.constant -1.000000e+30 : f32
    %59 = vector.broadcast %cst_33 : f32 to vector<16x128xf32>
    %60 = arith.select %58, %55, %59 : vector<16x128xi1>, vector<16x128xf32>
    %cst_34 = arith.constant dense<0xFF800000> : vector<16xf32>
    %61 = vector.multi_reduction <maximumf>, %60, %cst_34 [1] : vector<16x128xf32> to vector<16xf32>
    %62 = vector.shape_cast %61 : vector<16xf32> to vector<16x1xf32>
    %63 = vector.broadcast %62 : vector<16x1xf32> to vector<16x128xf32>
    %64 = arith.subf %60, %63 : vector<16x128xf32>
    %65 = math.exp %64 : vector<16x128xf32>
    %cst_35 = arith.constant dense<0.000000e+00> : vector<16xf32>
    %66 = vector.multi_reduction <add>, %65, %cst_35 [1] : vector<16x128xf32> to vector<16xf32>
    %67 = vector.shape_cast %66 : vector<16xf32> to vector<16x1xf32>
    %68 = tpu.reciprocal %67 {approx = true} : vector<16x1xf32> -> vector<16x1xf32>
    %69 = vector.broadcast %68 : vector<16x1xf32> to vector<16x128xf32>
    %70 = arith.mulf %65, %69 : vector<16x128xf32>
    %c0_36 = arith.constant 0 : index
    %c0_37 = arith.constant 0 : index
    %71 = vector.load %arg10[%c0_36, %c0_37] : memref<16x128xf32, #tpu.memory_space<vmem>>, vector<16x128xf32>
    tpu.vector_store %arg10[%c0_36, %c0_37], %70 {strides = array<i32>} : memref<16x128xf32, #tpu.memory_space<vmem>>, vector<16x128xf32>,
    return
  }
}

</mosaic_0001>

<bundles_post_ra>
// kernel: tpu_custom_call.1
= control target key start
LH: loop header
LB: loop body
LE: loop exit
PB: predicated region body
PF: predicated region fallthrough
CT: control target
= control target key end

     0   :  { %15 = vsyncpa [#allocation3], 0  ;;  %s1422_s0 = inlined_call_operand.hbm [shape: f32[16,16], index: 0, kind: input, shape index: {}]   ;;  %s1423_s1 = inlined_call_operand.hbm [shape: f32[16,128], index: 1, kind: input, shape index: {}]   ;;  %s1424_s2 = inlined_call_operand.hbm [shape: f32[256,128], index: 2, kind: input, shape index: {}]   ;;  %s1425_s3 = inlined_call_operand.vmem [shape: f32[1,128], index: 3, kind: input, shape index: {}]   ;;  %s1426_s4 = inlined_call_operand.hbm [shape: f32[256,128], index: 4, kind: input, shape index: {}]   ;;  %s1427_s5 = inlined_call_operand.vmem [shape: f32[1,128], index: 5, kind: input, shape index: {}]   ;;  %s1428_s6 = inlined_call_operand.hbm [shape: f32[256,128], index: 6, kind: input, shape index: {}]   ;;  %s1429_s7 = inlined_call_operand.vmem [shape: f32[1,128], index: 7, kind: input, shape index: {}]   ;;  %s1430_s8 = inlined_call_operand.hbm [shape: f32[128,128], index: 8, kind: input, shape index: {}]   ;;  %s1431_s9 = inlined_call_operand.vmem [shape: f32[1,128], index: 9, kind: input, shape index: {}]   ;;  %s1432_s10 = inlined_call_operand.hbm [shape: f32[16,128], index: 10, kind: output, shape index: {}]  }
   0x1   :  { %16 = vsyncpa [#allocation6], 0 }
   0x2   :  { %17 = vsyncpa [#allocation9], 0 }
   0x3   :  { %18 = vsyncpa [#allocation12], 0 }
   0x4   :  { %19 = vsyncpa [#allocation4], 0  ;;  %s1268_s13 = smov [#allocation5]   ;;  %s1269_s15 = smov [#allocation8]  }
   0x5   :  { %s37_s14 = sshll.u32 %s1268_s13, 4  ;;  %s63_s16 = sshll.u32 %s1269_s15, 4  ;;  %s38_s14 = int_to_ptr.vmem [resolvable:$true] %s37_s14  ;;  %s64_s16 = int_to_ptr.vmem [resolvable:$true] %s63_s16 }
   0x6   :  { %s1126_s17 = scalar_lea.vmem %s38_s14, 256  ;;  %p1131_p1 = scmp.lt.s32.totalorder %s38_s14, %s38_s14 }
   0x7   :  { %p1127_p0 = scmp.ne.s32.totalorder %s38_s14, %s1126_s17  ;;  %p1132_p2 = scmp.lt.s32.totalorder %s1126_s17, %s1126_s17 }
   0x9   :  { %p1133_p3 = por %p1132_p2, %p1131_p1 }
   0xb   :  { %p1134_p4 = pnand %p1133_p3, %p1127_p0 }
   0xd   :  { %1137 = shalt.err (!%p1134_p4)
}
   0xe   :  { %s1270_s18 = smov 128   ;;  %s1271_s19 = smov 8  }
   0xf   :  { %43 = dma.hbm_to_vmem [thread:$0]  %s1423_s1, 256, %s38_s14, [#allocation6], %s1270_s18, %s1270_s18, %s1271_s19  }
  0x10   :  { %s1146_s22 = scalar_lea.vmem %s64_s16, 4096  ;;  %p1151_p6 = scmp.lt.s32.totalorder %s64_s16, %s64_s16 }
  0x11   :  { %p1147_p5 = scmp.ne.s32.totalorder %s64_s16, %s1146_s22  ;;  %p1152_p7 = scmp.lt.s32.totalorder %s1146_s22, %s1146_s22 }
  0x13   :  { %p1153_p8 = por %p1152_p7, %p1151_p6 }
  0x15   :  { %p1154_p9 = pnand %p1153_p8, %p1147_p5 }
  0x17   :  { %1157 = shalt.err (!%p1154_p9)
}
  0x18   :  { %69 = dma.hbm_to_vmem [thread:$0]  %s1426_s4, 4096, %s64_s16, [#allocation9], %s1270_s18, %s1270_s18, %s1271_s19  }
  0x19   :  { %s1272_s25 = smov [#allocation2]   ;;  %s1273_s27 = smov [#allocation7]  }
  0x1a   :  { %s25_s26 = sshll.u32 %s1272_s25, 4  ;;  %s49_s28 = sshll.u32 %s1273_s27, 4  ;;  %s26_s26 = int_to_ptr.vmem [resolvable:$true] %s25_s26  ;;  %s50_s28 = int_to_ptr.vmem [resolvable:$true] %s49_s28 }
  0x1b   :  { %s1166_s1 = scalar_lea.vmem %s26_s26, 256  ;;  %p1171_p11 = scmp.lt.s32.totalorder %s26_s26, %s26_s26 }
  0x1c   :  { %p1167_p10 = scmp.ne.s32.totalorder %s26_s26, %s1166_s1  ;;  %p1172_p12 = scmp.lt.s32.totalorder %s1166_s1, %s1166_s1 }
  0x1e   :  { %p1173_p13 = por %p1172_p12, %p1171_p11 }
  0x20   :  { %p1174_p0 = pnand %p1173_p13, %p1167_p10 }
  0x22   :  { %1177 = shalt.err (!%p1174_p0)
}
  0x23   :  { %31 = dma.hbm_to_vmem [thread:$0]  %s1422_s0, 256, %s26_s26, [#allocation3], %s1270_s18, %s1270_s18, %s1271_s19  }
  0x24   :  { %s1186_s4 = scalar_lea.vmem %s50_s28, 4096  ;;  %p1191_p2 = scmp.lt.s32.totalorder %s50_s28, %s50_s28 }
  0x25   :  { %p1187_p1 = scmp.ne.s32.totalorder %s50_s28, %s1186_s4  ;;  %p1192_p3 = scmp.lt.s32.totalorder %s1186_s4, %s1186_s4 }
  0x27   :  { %p1193_p4 = por %p1192_p3, %p1191_p2 }
  0x29   :  { %p1194_p5 = pnand %p1193_p4, %p1187_p1 }
  0x2b   :  { %1197 = shalt.err (!%p1194_p5)
}
  0x2c   :  { %55 = dma.hbm_to_vmem [thread:$0]  %s1424_s2, 4096, %s50_s28, [#allocation6], %s1270_s18, %s1270_s18, %s1271_s19  }
  0x2d   :  { %s1274_s13 = smov [#allocation10]   ;;  %s1275_s15 = smov [#allocation11]  }
  0x2e   :  { %s77_s14 = sshll.u32 %s1274_s13, 4  ;;  %s91_s16 = sshll.u32 %s1275_s15, 4  ;;  %s78_s14 = int_to_ptr.vmem [resolvable:$true] %s77_s14  ;;  %s92_s16 = int_to_ptr.vmem [resolvable:$true] %s91_s16 }
  0x2f   :  { %s1206_s0 = scalar_lea.vmem %s78_s14, 4096  ;;  %p1211_p7 = scmp.lt.s32.totalorder %s78_s14, %s78_s14 }
  0x30   :  { %p1207_p6 = scmp.ne.s32.totalorder %s78_s14, %s1206_s0  ;;  %p1212_p8 = scmp.lt.s32.totalorder %s1206_s0, %s1206_s0 }
  0x32   :  { %p1213_p9 = por %p1212_p8, %p1211_p7 }
  0x34   :  { %p1214_p10 = pnand %p1213_p9, %p1207_p6 }
  0x36   :  { %1217 = shalt.err (!%p1214_p10)
}
  0x37   :  { %83 = dma.hbm_to_vmem [thread:$0]  %s1428_s6, 4096, %s78_s14, [#allocation9], %s1270_s18, %s1270_s18, %s1271_s19  }
  0x38   :  { %s1226_s2 = scalar_lea.vmem %s92_s16, 2048  ;;  %p1231_p12 = scmp.lt.s32.totalorder %s92_s16, %s92_s16 }
  0x39   :  { %p1227_p11 = scmp.ne.s32.totalorder %s92_s16, %s1226_s2  ;;  %p1232_p13 = scmp.lt.s32.totalorder %s1226_s2, %s1226_s2 }
  0x3b   :  { %p1233_p0 = por %p1232_p13, %p1231_p12 }
  0x3d   :  { %p1234_p1 = pnand %p1233_p0, %p1227_p11 }
  0x3f   :  { %1237 = shalt.err (!%p1234_p1)
}
  0x40   :  { %97 = dma.hbm_to_vmem [thread:$0]  %s1430_s8, 2048, %s92_s16, [#allocation12], %s1270_s18, %s1270_s18, %s1271_s19  }
  0x41   :  { %1258 = dma.done.wait [#allocation3], 256  }
  0x42   :  { %1259 = vsyncadd [#allocation3], 4294967040 }
  0x43   :  { %1260 = dma.done.wait [#allocation6], 4352  }
  0x44   :  { %1261 = vsyncadd [#allocation6], 4294962944 }
  0x45   :  { %1262 = dma.done.wait [#allocation9], 8192  }
  0x46   :  { %1263 = vsyncadd [#allocation9], 4294959104 }
  0x47   :  { %1264 = dma.done.wait [#allocation12], 2048  }
  0x48   :  { %1265 = vsyncadd [#allocation12], 4294965248  ;;  %vm122_vm0 = vcmask 130048   ;;  %v1368_v0 = vld [vmem:[#allocation5 + $0x8] sm:$0xff]  ;;  %v120_v1 = vld [vmem:[#allocation5] sm:$0xff] }
  0x49   :  { %v1370_v2 = vld [vmem:[#allocation2] sm:$0xff]  ;;  %1033 = vmatprep.subr.mxu0 %v1368_v0  ;;  %v235_v3 = vld [vmem:[#allocation7 + $0xf8] sm:$0xff]  ;;  %v1376_v5 = vld [vmem:[#allocation2 + $0x8] sm:$0xff]  ;;  %307 = vmatprep.mubr.f32.mxu1 %v120_v1 }
  0x4a   :  { %1037 = vmatprep.mubr.msk.f32.mxu0 %vm122_vm0, %v1370_v2  ;;  %v219_v4 = vld [vmem:[#allocation7 + $0x78] sm:$0xff]  ;;  %1034 = vmatpush3.msra.mxu0 %v1368_v0  ;;  %v234_v6 = vld [vmem:[#allocation7 + $0xf0] sm:$0xff]  ;;  %v233_v8 = vld [vmem:[#allocation7 + $0xe8] sm:$0xff] }
  0x4b   :  { %893 = vmatprep.subr.mxu1 %v235_v3  ;;  %v218_v7 = vld [vmem:[#allocation7 + $0x70] sm:$0xff]  ;;  %1035 = vmatprep.subr.mxu0 %v120_v1  ;;  %v217_v9 = vld [vmem:[#allocation7 + $0x68] sm:$0xff]  ;;  %v232_v10 = vld [vmem:[#allocation7 + $0xe0] sm:$0xff] }
  0x4c   :  { %894 = vmatpush3.msra.mxu1 %v219_v4  ;;  %1036 = vmatpush3.msra.mxu0 %v120_v1  ;;  %v216_v11 = vld [vmem:[#allocation7 + $0x60] sm:$0xff]  ;;  %v231_v12 = vld [vmem:[#allocation7 + $0xd8] sm:$0xff]  ;;  %v230_v14 = vld [vmem:[#allocation7 + $0xd0] sm:$0xff] }
  0x4d   :  { %895 = vmatprep.subr.mxu1 %v234_v6  ;;  %1038 = vmatmul.mubr.msk.f32.vlgmr.msra.gmra.mxu0 %vm122_vm0, %v1376_v5  ;;  %v215_v13 = vld [vmem:[#allocation7 + $0x58] sm:$0xff]  ;;  %v214_v15 = vld [vmem:[#allocation7 + $0x50] sm:$0xff]  ;;  %v229_v16 = vld [vmem:[#allocation7 + $0xc8] sm:$0xff] }
  0x4e   :  { %896 = vmatpush3.msra.mxu1 %v218_v7  ;;  %1044 = vmatprep.mubr.msk.f32.mxu0 %vm122_vm0, %v1370_v2  ;;  %v213_v17 = vld [vmem:[#allocation7 + $0x48] sm:$0xff]  ;;  %v228_v18 = vld [vmem:[#allocation7 + $0xc0] sm:$0xff]  ;;  %v227_v20 = vld [vmem:[#allocation7 + $0xb8] sm:$0xff] }
  0x4f   :  { %897 = vmatprep.subr.mxu1 %v233_v8  ;;  %v212_v19 = vld [vmem:[#allocation7 + $0x40] sm:$0xff]  ;;  %v211_v21 = vld [vmem:[#allocation7 + $0x38] sm:$0xff]  ;;  %v226_v22 = vld [vmem:[#allocation7 + $0xb0] sm:$0xff] }
  0x50   :  { %898 = vmatpush3.msra.mxu1 %v217_v9  ;;  %v210_v23 = vld [vmem:[#allocation7 + $0x30] sm:$0xff]  ;;  %v225_v24 = vld [vmem:[#allocation7 + $0xa8] sm:$0xff]  ;;  %v224_v26 = vld [vmem:[#allocation7 + $0xa0] sm:$0xff] }
  0x51   :  { %899 = vmatprep.subr.mxu1 %v232_v10  ;;  %v209_v25 = vld [vmem:[#allocation7 + $0x28] sm:$0xff]  ;;  %v208_v27 = vld [vmem:[#allocation7 + $0x20] sm:$0xff]  ;;  %v223_v28 = vld [vmem:[#allocation7 + $0x98] sm:$0xff] }
  0x52   :  { %900 = vmatpush3.msra.mxu1 %v216_v11  ;;  %v207_v29 = vld [vmem:[#allocation7 + $0x18] sm:$0xff]  ;;  %v222_v30 = vld [vmem:[#allocation7 + $0x90] sm:$0xff]  ;;  %v221_v32 = vld [vmem:[#allocation7 + $0x88] sm:$0xff] }
  0x53   :  { %901 = vmatprep.subr.mxu1 %v231_v12  ;;  %v206_v31 = vld [vmem:[#allocation7 + $0x10] sm:$0xff]  ;;  %v205_v33 = vld [vmem:[#allocation7 + $0x8] sm:$0xff]  ;;  %v220_v34 = vld [vmem:[#allocation7 + $0x80] sm:$0xff] }
  0x54   :  { %902 = vmatpush3.msra.mxu1 %v215_v13  ;;  %v204_v35 = vld [vmem:[#allocation7] sm:$0xff]  ;;  %v438_v59 = vld [vmem:[#allocation8 + $0xf8] sm:$0xff]  ;;  %v437_v61 = vld [vmem:[#allocation8 + $0xf0] sm:$0xff] }
  0x55   :  { %903 = vmatprep.subr.mxu1 %v230_v14  ;;  %v881_v44 = vld [vmem:[%s1425_s3] ss:$0 sm:$0xff]  ;;  %v422_v60 = vld [vmem:[#allocation8 + $0x78] sm:$0xff]  ;;  %v421_v62 = vld [vmem:[#allocation8 + $0x70] sm:$0xff] }
  0x56   :  { %904 = vmatpush3.msra.mxu1 %v214_v15  ;;  %v436_v63 = vld [vmem:[#allocation8 + $0xe8] sm:$0xff]  ;;  %v435_v1 = vld [vmem:[#allocation8 + $0xe0] sm:$0xff]  ;;  %v434_v3 = vld [vmem:[#allocation8 + $0xd8] sm:$0xff] }
  0x57   :  { %905 = vmatprep.subr.mxu1 %v229_v16  ;;  %v418_v4 = vld [vmem:[#allocation8 + $0x58] sm:$0xff]  ;;  %v433_v6 = vld [vmem:[#allocation8 + $0xd0] sm:$0xff]  ;;  %v432_v8 = vld [vmem:[#allocation8 + $0xc8] sm:$0xff] }
  0x58   :  { %906 = vmatpush3.msra.mxu1 %v213_v17  ;;  %v417_v7 = vld [vmem:[#allocation8 + $0x50] sm:$0xff]  ;;  %v416_v9 = vld [vmem:[#allocation8 + $0x48] sm:$0xff]  ;;  %v431_v10 = vld [vmem:[#allocation8 + $0xc0] sm:$0xff] }
  0x59   :  { %907 = vmatprep.subr.mxu1 %v228_v18  ;;  %v415_v11 = vld [vmem:[#allocation8 + $0x40] sm:$0xff]  ;;  %v430_v12 = vld [vmem:[#allocation8 + $0xb8] sm:$0xff]  ;;  %v429_v14 = vld [vmem:[#allocation8 + $0xb0] sm:$0xff] }
  0x5a   :  { %908 = vmatpush3.msra.mxu1 %v212_v19  ;;  %v414_v13 = vld [vmem:[#allocation8 + $0x38] sm:$0xff]  ;;  %v413_v15 = vld [vmem:[#allocation8 + $0x30] sm:$0xff]  ;;  %v428_v16 = vld [vmem:[#allocation8 + $0xa8] sm:$0xff] }
  0x5b   :  { %909 = vmatprep.subr.mxu1 %v227_v20  ;;  %v412_v17 = vld [vmem:[#allocation8 + $0x28] sm:$0xff]  ;;  %v427_v18 = vld [vmem:[#allocation8 + $0xa0] sm:$0xff]  ;;  %v426_v20 = vld [vmem:[#allocation8 + $0x98] sm:$0xff] }
  0x5c   :  { %910 = vmatpush3.msra.mxu1 %v211_v21  ;;  %v411_v19 = vld [vmem:[#allocation8 + $0x20] sm:$0xff]  ;;  %v410_v21 = vld [vmem:[#allocation8 + $0x18] sm:$0xff] }
  0x5d   :  { %911 = vmatprep.subr.mxu1 %v226_v22  ;;  %v425_v22 = vld [vmem:[#allocation8 + $0x90] sm:$0xff] }
  0x5e   :  { %912 = vmatpush3.msra.mxu1 %v210_v23  ;;  %v409_v23 = vld [vmem:[#allocation8 + $0x10] sm:$0xff] }
  0x5f   :  { %913 = vmatprep.subr.mxu1 %v225_v24  ;;  %v424_v24 = vld [vmem:[#allocation8 + $0x88] sm:$0xff] }
  0x60   :  { %914 = vmatpush3.msra.mxu1 %v209_v25  ;;  %v408_v25 = vld [vmem:[#allocation8 + $0x8] sm:$0xff] }
  0x61   :  { %915 = vmatprep.subr.mxu1 %v224_v26  ;;  %v423_v26 = vld [vmem:[#allocation8 + $0x80] sm:$0xff] }
  0x62   :  { %916 = vmatpush3.msra.mxu1 %v208_v27  ;;  %v407_v27 = vld [vmem:[#allocation8] sm:$0xff] }
  0x63   :  { %917 = vmatprep.subr.mxu1 %v223_v28 }
  0x64   :  { %918 = vmatpush3.msra.mxu1 %v207_v29 }
  0x65   :  { %919 = vmatprep.subr.mxu1 %v222_v30 }
  0x66   :  { %920 = vmatpush3.msra.mxu1 %v206_v31 }
  0x67   :  { %921 = vmatprep.subr.mxu1 %v221_v32 }
  0x68   :  { %922 = vmatpush3.msra.mxu1 %v205_v33 }
  0x69   :  { %923 = vmatprep.subr.mxu1 %v220_v34 }
  0x6a   :  { %924 = vmatpush3.msra.mxu1 %v204_v35 }
 0x10d   :  { %v1039_v36 = vpop.f32.mrf.mxu0 }
 0x10f   :  { %v195_v37 = vpop.f32.mrf.mxu0 }
 0x110   :  { %308 = vmatmul.mubr.f32.vlgmr.msra.gmra.mxu1 %v195_v37 }
 0x111   :  { %312 = vmatprep.mubr.f32.mxu1 %v1368_v0  ;;  %v420_v0 = vld [vmem:[#allocation8 + $0x68] sm:$0xff] }
 0x114   :  { %313 = vmatmul.mubr.f32.gmra.mxu1 %v1039_v36  ;;  %v884_v36 = vld [vmem:[%s1427_s5] ss:$0 sm:$0xff] }
 0x115   :  { %1051 = vmatprep.mubr.msk.f32.mxu1 %vm122_vm0, %v1370_v2  ;;  %v419_v2 = vld [vmem:[#allocation8 + $0x60] sm:$0xff] }
 0x1d0   :  { %v925_v38 = vpop.f32.mrf.mxu1 }
 0x1d2   :  { %v926_v39 = vpop.f32.mrf.mxu1 }
 0x1d3   :  { %v927_v42 = vadd.f32 %v926_v39, %v925_v38 }
 0x1d4   :  { %v928_v40 = vpop.f32.mrf.mxu1 }
 0x1d5   :  { %v310_v46 = vadd.f32 %v927_v42, %v881_v44  ;;  %v625_v42 = vld [vmem:[#allocation10 + $0x78] sm:$0xff] }
 0x1d6   :  { %v929_v41 = vpop.f32.mrf.mxu1 }
 0x1d7   :  { %v930_v43 = vadd.f32 %v929_v41, %v928_v40  ;;  %v318_v48 = vmul.f32 %v310_v46, %v310_v46  ;;  %v641_v41 = vld [vmem:[#allocation10 + $0xf8] sm:$0xff] }
 0x1d9   :  { %v315_v45 = vadd.f32 %v930_v43, %v881_v44  ;;  %v640_v43 = vld [vmem:[#allocation10 + $0xf0] sm:$0xff] }
 0x1da   :  { %v624_v44 = vld [vmem:[#allocation10 + $0x70] sm:$0xff] }
 0x1db   :  { %v319_v47 = vmul.f32 %v315_v45, %v315_v45 }
 0x1dd   :  { %322 = vadd.xlane.f32.xlu0 %v319_v47  ;;  %v638_v47 = vld [vmem:[#allocation10 + $0xe0] sm:$0xff] }
 0x1e1   :  { %320 = vadd.xlane.f32.xlu0 %v318_v48  ;;  %v622_v48 = vld [vmem:[#allocation10 + $0x60] sm:$0xff] }
 0x266   :  { %v323_v49 = vpop.xlane.xlu0 %322 }
 0x267   :  { %v325_v50 = vmax.f32 %v323_v49, 1e-24  ;;  %v637_v49 = vld [vmem:[#allocation10 + $0xd8] sm:$0xff] }
 0x269   :  { %1098 = vrsqrt.f32 %v325_v50  ;;  %v621_v50 = vld [vmem:[#allocation10 + $0x58] sm:$0xff] }
 0x26a   :  { %v321_v51 = vpop.xlane.xlu0 %320 }
 0x26b   :  { %v324_v52 = vmax.f32 %v321_v51, 1e-24  ;;  %v636_v51 = vld [vmem:[#allocation10 + $0xd0] sm:$0xff] }
 0x26d   :  { %1100 = vrsqrt.f32 %v324_v52  ;;  %v620_v52 = vld [vmem:[#allocation10 + $0x50] sm:$0xff] }
 0x276   :  { %v1099_v53 = vpop.eup %1098 }
 0x277   :  { %v329_v54 = vmul.f32 %v1099_v53, %v315_v45  ;;  %v639_v45 = vld [vmem:[#allocation10 + $0xe8] sm:$0xff] }
 0x278   :  { %v635_v53 = vld [vmem:[#allocation10 + $0xc8] sm:$0xff] }
 0x279   :  { %v1388_v55 = vmax.f32 %v329_v54, 0.0  ;;  %v619_v54 = vld [vmem:[#allocation10 + $0x48] sm:$0xff] }
 0x27a   :  { %v1101_v56 = vpop.eup %1100 }
 0x27b   :  { %1040 = vmatprep.subr.mxu0 %v1388_v55  ;;  %v328_v57 = vmul.f32 %v1101_v56, %v310_v46  ;;  %v623_v46 = vld [vmem:[#allocation10 + $0x68] sm:$0xff]  ;;  %v618_v56 = vld [vmem:[#allocation10 + $0x40] sm:$0xff] }
 0x27c   :  { %1041 = vmatpush3.msra.mxu0 %v1388_v55 }
 0x27d   :  { %v330_v58 = vmax.f32 %v328_v57, 0.0  ;;  %v633_v57 = vld [vmem:[#allocation10 + $0xb8] sm:$0xff] }
 0x27f   :  { %1042 = vmatprep.subr.mxu0 %v330_v58 }
 0x280   :  { %1043 = vmatpush3.msra.mxu0 %v330_v58 }
 0x281   :  { %1045 = vmatmul.mubr.msk.f32.vlgmr.msra.gmra.mxu0 %vm122_vm0, %v1376_v5  ;;  %935 = vmatprep.subr.mxu0 %v438_v59  ;;  %v632_v59 = vld [vmem:[#allocation10 + $0xb0] sm:$0xff] }
 0x282   :  { %510 = vmatprep.mubr.f32.mxu0 %v330_v58  ;;  %936 = vmatpush3.msra.mxu0 %v422_v60  ;;  %v617_v58 = vld [vmem:[#allocation10 + $0x38] sm:$0xff]  ;;  %v616_v60 = vld [vmem:[#allocation10 + $0x30] sm:$0xff] }
 0x283   :  { %937 = vmatprep.subr.mxu0 %v437_v61  ;;  %v631_v61 = vld [vmem:[#allocation10 + $0xa8] sm:$0xff] }
 0x284   :  { %938 = vmatpush3.msra.mxu0 %v421_v62  ;;  %v615_v62 = vld [vmem:[#allocation10 + $0x28] sm:$0xff] }
 0x285   :  { %939 = vmatprep.subr.mxu0 %v436_v63  ;;  %v630_v63 = vld [vmem:[#allocation10 + $0xa0] sm:$0xff] }
 0x286   :  { %940 = vmatpush3.msra.mxu0 %v420_v0  ;;  %v614_v0 = vld [vmem:[#allocation10 + $0x20] sm:$0xff] }
 0x287   :  { %941 = vmatprep.subr.mxu0 %v435_v1  ;;  %v629_v1 = vld [vmem:[#allocation10 + $0x98] sm:$0xff] }
 0x288   :  { %942 = vmatpush3.msra.mxu0 %v419_v2  ;;  %v613_v2 = vld [vmem:[#allocation10 + $0x18] sm:$0xff] }
 0x289   :  { %943 = vmatprep.subr.mxu0 %v434_v3  ;;  %v628_v3 = vld [vmem:[#allocation10 + $0x90] sm:$0xff] }
 0x28a   :  { %944 = vmatpush3.msra.mxu0 %v418_v4  ;;  %v612_v4 = vld [vmem:[#allocation10 + $0x10] sm:$0xff] }
 0x28b   :  { %945 = vmatprep.subr.mxu0 %v433_v6  ;;  %v627_v6 = vld [vmem:[#allocation10 + $0x88] sm:$0xff] }
 0x28c   :  { %946 = vmatpush3.msra.mxu0 %v417_v7 }
 0x28d   :  { %947 = vmatprep.subr.mxu0 %v432_v8 }
 0x28e   :  { %948 = vmatpush3.msra.mxu0 %v416_v9 }
 0x28f   :  { %949 = vmatprep.subr.mxu0 %v431_v10 }
 0x290   :  { %950 = vmatpush3.msra.mxu0 %v415_v11 }
 0x291   :  { %951 = vmatprep.subr.mxu0 %v430_v12 }
 0x292   :  { %952 = vmatpush3.msra.mxu0 %v414_v13 }
 0x293   :  { %953 = vmatprep.subr.mxu0 %v429_v14 }
 0x294   :  { %954 = vmatpush3.msra.mxu0 %v413_v15 }
 0x295   :  { %955 = vmatprep.subr.mxu0 %v428_v16 }
 0x296   :  { %956 = vmatpush3.msra.mxu0 %v412_v17  ;;  %v611_v17 = vld [vmem:[#allocation10 + $0x8] sm:$0xff] }
 0x297   :  { %957 = vmatprep.subr.mxu0 %v427_v18  ;;  %v626_v18 = vld [vmem:[#allocation10 + $0x80] sm:$0xff] }
 0x298   :  { %958 = vmatpush3.msra.mxu0 %v411_v19  ;;  %v610_v19 = vld [vmem:[#allocation10] sm:$0xff] }
 0x299   :  { %959 = vmatprep.subr.mxu0 %v426_v20 }
 0x29a   :  { %960 = vmatpush3.msra.mxu0 %v410_v21 }
 0x29b   :  { %961 = vmatprep.subr.mxu0 %v425_v22  ;;  %v751_v22 = vld [vmem:[#allocation11 + $0x78] sm:$0xff] }
 0x29c   :  { %962 = vmatpush3.msra.mxu0 %v409_v23  ;;  %v750_v23 = vld [vmem:[#allocation11 + $0x70] sm:$0xff] }
 0x29d   :  { %963 = vmatprep.subr.mxu0 %v424_v24  ;;  %v749_v24 = vld [vmem:[#allocation11 + $0x68] sm:$0xff] }
 0x29e   :  { %964 = vmatpush3.msra.mxu0 %v408_v25  ;;  %v748_v25 = vld [vmem:[#allocation11 + $0x60] sm:$0xff] }
 0x29f   :  { %965 = vmatprep.subr.mxu0 %v423_v26 }
 0x2a0   :  { %966 = vmatpush3.msra.mxu0 %v407_v27  ;;  %v887_v27 = vld [vmem:[%s1429_s7] ss:$0 sm:$0xff] }
 0x2a1   :  { %977 = vmatprep.subr.mxu0 %v641_v41  ;;  %v742_v41 = vld [vmem:[#allocation11 + $0x30] sm:$0xff] }
 0x341   :  { %v1046_v28 = vpop.f32.mrf.mxu0 }
 0x343   :  { %v398_v29 = vpop.f32.mrf.mxu0 }
 0x344   :  { %511 = vmatmul.mubr.f32.vlgmr.msra.gmra.mxu0 %v398_v29 }
 0x345   :  { %515 = vmatprep.mubr.f32.mxu0 %v1388_v55  ;;  %978 = vmatpush3.msra.mxu0 %v625_v42  ;;  %v634_v55 = vld [vmem:[#allocation10 + $0xc0] sm:$0xff]  ;;  %v741_v42 = vld [vmem:[#allocation11 + $0x28] sm:$0xff] }
 0x346   :  { %979 = vmatprep.subr.mxu0 %v640_v43  ;;  %v740_v43 = vld [vmem:[#allocation11 + $0x20] sm:$0xff] }
 0x347   :  { %980 = vmatpush3.msra.mxu0 %v624_v44  ;;  %v739_v44 = vld [vmem:[#allocation11 + $0x18] sm:$0xff] }
 0x348   :  { %516 = vmatmul.mubr.f32.gmra.mxu0 %v1046_v28  ;;  %981 = vmatprep.subr.mxu0 %v639_v45  ;;  %v738_v45 = vld [vmem:[#allocation11 + $0x10] sm:$0xff] }
 0x349   :  { %982 = vmatpush3.msra.mxu0 %v623_v46  ;;  %v737_v46 = vld [vmem:[#allocation11 + $0x8] sm:$0xff] }
 0x34a   :  { %983 = vmatprep.subr.mxu0 %v638_v47  ;;  %v736_v47 = vld [vmem:[#allocation11] sm:$0xff] }
 0x34b   :  { %984 = vmatpush3.msra.mxu0 %v622_v48 }
 0x34c   :  { %985 = vmatprep.subr.mxu0 %v637_v49 }
 0x34d   :  { %986 = vmatpush3.msra.mxu0 %v621_v50 }
 0x34e   :  { %987 = vmatprep.subr.mxu0 %v636_v51 }
 0x34f   :  { %988 = vmatpush3.msra.mxu0 %v620_v52 }
 0x350   :  { %989 = vmatprep.subr.mxu0 %v635_v53 }
 0x351   :  { %990 = vmatpush3.msra.mxu0 %v619_v54 }
 0x352   :  { %991 = vmatprep.subr.mxu0 %v634_v55 }
 0x353   :  { %992 = vmatpush3.msra.mxu0 %v618_v56  ;;  %v834_v56 = vlaneseq }
 0x354   :  { %993 = vmatprep.subr.mxu0 %v633_v57 }
 0x355   :  { %994 = vmatpush3.msra.mxu0 %v617_v58  ;;  %v835_v57 = vand.u32 127, %v834_v56  ;;  %v888_v58 = vld [vmem:[%s1431_s9] ss:$0 sm:$0xff]  ;;  %s1276_s9 = smov [#allocation13]  }
 0x356   :  { %995 = vmatprep.subr.mxu0 %v632_v59  ;;  %s864_s26 = sshll.u32 %s1276_s9, 4  ;;  %s865_s26 = int_to_ptr.vmem [resolvable:$true] %s864_s26 }
 0x357   :  { %996 = vmatpush3.msra.mxu0 %v616_v60  ;;  %vm836_vm1 = vcmp.lt.s32.totalorder %v835_v57, 4  ;;  %s1238_s27 = scalar_lea.vmem %s865_s26, 256  ;;  %p1243_p3 = scmp.lt.s32.totalorder %s865_s26, %s865_s26 }
 0x358   :  { %997 = vmatprep.subr.mxu0 %v631_v61  ;;  %p1239_p2 = scmp.ne.s32.totalorder %s865_s26, %s1238_s27  ;;  %p1244_p4 = scmp.lt.s32.totalorder %s1238_s27, %s1238_s27 }
 0x359   :  { %998 = vmatpush3.msra.mxu0 %v615_v62 }
 0x35a   :  { %999 = vmatprep.subr.mxu0 %v630_v63  ;;  %p1245_p5 = por %p1244_p4, %p1243_p3 }
 0x35b   :  { %1000 = vmatpush3.msra.mxu0 %v614_v0 }
 0x35c   :  { %1001 = vmatprep.subr.mxu0 %v629_v1  ;;  %p1246_p6 = pnand %p1245_p5, %p1239_p2 }
 0x35d   :  { %1002 = vmatpush3.msra.mxu0 %v613_v2 }
 0x35e   :  { %1003 = vmatprep.subr.mxu0 %v628_v3 }
 0x35f   :  { %1004 = vmatpush3.msra.mxu0 %v612_v4 }
 0x360   :  { %1005 = vmatprep.subr.mxu0 %v627_v6 }
 0x361   :  { %1006 = vmatpush3.msra.mxu0 %v611_v17 }
 0x362   :  { %1007 = vmatprep.subr.mxu0 %v626_v18 }
 0x363   :  { %1008 = vmatpush3.msra.mxu0 %v610_v19 }
 0x404   :  { %v967_v30 = vpop.f32.mrf.mxu0 }
 0x406   :  { %v968_v31 = vpop.f32.mrf.mxu0 }
 0x407   :  { %v969_v34 = vadd.f32 %v968_v31, %v967_v30 }
 0x408   :  { %v970_v32 = vpop.f32.mrf.mxu0 }
 0x409   :  { %v1400_v38 = vadd.f32 %v969_v34, %v884_v36 }
 0x40a   :  { %v971_v33 = vpop.f32.mrf.mxu0 }
 0x40b   :  { %v972_v35 = vadd.f32 %v971_v33, %v970_v32  ;;  %v521_v40 = vmul.f32 %v1400_v38, %v1400_v38 }
 0x40d   :  { %v1398_v37 = vadd.f32 %v972_v35, %v884_v36 }
 0x40f   :  { %v522_v39 = vmul.f32 %v1398_v37, %v1398_v37 }
 0x411   :  { %525 = vadd.xlane.f32.xlu1 %v522_v39  ;;  %v744_v39 = vld [vmem:[#allocation11 + $0x40] sm:$0xff] }
 0x415   :  { %523 = vadd.xlane.f32.xlu1 %v521_v40  ;;  %v743_v40 = vld [vmem:[#allocation11 + $0x38] sm:$0xff] }
 0x49a   :  { %v526_v7 = vpop.xlane.xlu1 %525 }
 0x49b   :  { %v528_v8 = vmax.f32 %v526_v7, 1e-24 }
 0x49d   :  { %1102 = vrsqrt.f32 %v528_v8 }
 0x49e   :  { %v524_v9 = vpop.xlane.xlu1 %523 }
 0x49f   :  { %v527_v10 = vmax.f32 %v524_v9, 1e-24 }
 0x4a1   :  { %1104 = vrsqrt.f32 %v527_v10 }
 0x4aa   :  { %v1103_v11 = vpop.eup %1102 }
 0x4ab   :  { %v532_v12 = vmul.f32 %v1103_v11, %v1398_v37  ;;  %v746_v37 = vld [vmem:[#allocation11 + $0x50] sm:$0xff] }
 0x4ad   :  { %v534_v13 = vmax.f32 %v532_v12, 0.0 }
 0x4ae   :  { %v1105_v14 = vpop.eup %1104 }
 0x4af   :  { %1047 = vmatprep.subr.mxu1 %v534_v13  ;;  %v531_v15 = vmul.f32 %v1105_v14, %v1400_v38  ;;  %v745_v38 = vld [vmem:[#allocation11 + $0x48] sm:$0xff] }
 0x4b0   :  { %1048 = vmatpush3.msra.mxu1 %v534_v13 }
 0x4b1   :  { %v533_v16 = vmax.f32 %v531_v15, 0.0 }
 0x4b3   :  { %1049 = vmatprep.subr.mxu1 %v533_v16  ;;  %713 = vmatprep.mubr.f32.mxu0 %v533_v16 }
 0x4b4   :  { %1050 = vmatpush3.msra.mxu1 %v533_v16 }
 0x4b5   :  { %1052 = vmatmul.mubr.msk.f32.vlgmr.msra.gmra.mxu1 %vm122_vm0, %v1376_v5  ;;  %1054 = vmatprep.subr.mxu1 %v751_v22  ;;  %v747_v5 = vld [vmem:[#allocation11 + $0x58] sm:$0xff] }
 0x4b6   :  { %1055 = vmatpush3.msra.mxu1 %v751_v22 }
 0x4b7   :  { %1056 = vmatprep.subr.mxu1 %v750_v23 }
 0x4b8   :  { %1057 = vmatpush3.msra.mxu1 %v750_v23 }
 0x4b9   :  { %1058 = vmatprep.subr.mxu1 %v749_v24 }
 0x4ba   :  { %1059 = vmatpush3.msra.mxu1 %v749_v24 }
 0x4bb   :  { %1060 = vmatprep.subr.mxu1 %v748_v25 }
 0x4bc   :  { %1061 = vmatpush3.msra.mxu1 %v748_v25 }
 0x4bd   :  { %1062 = vmatprep.subr.mxu1 %v747_v5 }
 0x4be   :  { %1063 = vmatpush3.msra.mxu1 %v747_v5 }
 0x4bf   :  { %1064 = vmatprep.subr.mxu1 %v746_v37 }
 0x4c0   :  { %1065 = vmatpush3.msra.mxu1 %v746_v37 }
 0x4c1   :  { %1066 = vmatprep.subr.mxu1 %v745_v38 }
 0x4c2   :  { %1067 = vmatpush3.msra.mxu1 %v745_v38 }
 0x4c3   :  { %1068 = vmatprep.subr.mxu1 %v744_v39 }
 0x4c4   :  { %1069 = vmatpush3.msra.mxu1 %v744_v39 }
 0x4c5   :  { %1070 = vmatprep.subr.mxu1 %v743_v40 }
 0x4c6   :  { %1071 = vmatpush3.msra.mxu1 %v743_v40 }
 0x4c7   :  { %1072 = vmatprep.subr.mxu1 %v742_v41 }
 0x4c8   :  { %1073 = vmatpush3.msra.mxu1 %v742_v41 }
 0x4c9   :  { %1074 = vmatprep.subr.mxu1 %v741_v42 }
 0x4ca   :  { %1075 = vmatpush3.msra.mxu1 %v741_v42 }
 0x4cb   :  { %1076 = vmatprep.subr.mxu1 %v740_v43 }
 0x4cc   :  { %1077 = vmatpush3.msra.mxu1 %v740_v43 }
 0x4cd   :  { %1078 = vmatprep.subr.mxu1 %v739_v44 }
 0x4ce   :  { %1079 = vmatpush3.msra.mxu1 %v739_v44 }
 0x4cf   :  { %1080 = vmatprep.subr.mxu1 %v738_v45 }
 0x4d0   :  { %1081 = vmatpush3.msra.mxu1 %v738_v45 }
 0x4d1   :  { %1082 = vmatprep.subr.mxu1 %v737_v46 }
 0x4d2   :  { %1083 = vmatpush3.msra.mxu1 %v737_v46 }
 0x4d3   :  { %1084 = vmatprep.subr.mxu1 %v736_v47 }
 0x4d4   :  { %1085 = vmatpush3.msra.mxu1 %v736_v47 }
 0x575   :  { %v1053_v20 = vpop.f32.mrf.mxu1 }
 0x577   :  { %v601_v21 = vpop.f32.mrf.mxu1 }
 0x578   :  { %714 = vmatmul.mubr.f32.vlgmr.msra.gmra.mxu0 %v601_v21 }
 0x579   :  { %718 = vmatprep.mubr.f32.mxu0 %v534_v13 }
 0x57c   :  { %719 = vmatmul.mubr.f32.gmra.mxu0 %v1053_v20 }
 0x638   :  { %v1009_v26 = vpop.f32.mrf.mxu0 }
 0x63a   :  { %v1010_v28 = vpop.f32.mrf.mxu0 }
 0x63b   :  { %v1011_v29 = vadd.f32 %v1010_v28, %v1009_v26 }
 0x63c   :  { %v1012_v30 = vpop.f32.mrf.mxu0 }
 0x63d   :  { %v716_v31 = vadd.f32 %v1011_v29, %v887_v27 }
 0x63e   :  { %v1013_v32 = vpop.f32.mrf.mxu0 }
 0x63f   :  { %v1014_v33 = vadd.f32 %v1013_v32, %v1012_v30  ;;  %v724_v34 = vmul.f32 %v716_v31, %v716_v31 }
 0x641   :  { %v721_v35 = vadd.f32 %v1014_v33, %v887_v27  ;;  %726 = vadd.xlane.f32.xlu0 %v724_v34 }
 0x643   :  { %v725_v36 = vmul.f32 %v721_v35, %v721_v35 }
 0x645   :  { %728 = vadd.xlane.f32.xlu1 %v725_v36 }
 0x6ca   :  { %v727_v48 = vpop.xlane.xlu0 %726 }
 0x6cb   :  { %v730_v49 = vmax.f32 %v727_v48, 1e-24 }
 0x6cd   :  { %1106 = vrsqrt.f32 %v730_v49 }
 0x6ce   :  { %v729_v50 = vpop.xlane.xlu1 %728 }
 0x6cf   :  { %v731_v51 = vmax.f32 %v729_v50, 1e-24 }
 0x6d1   :  { %1108 = vrsqrt.f32 %v731_v51 }
 0x6da   :  { %v1107_v52 = vpop.eup %1106 }
 0x6db   :  { %v734_v53 = vmul.f32 %v1107_v52, %v716_v31 }
 0x6dd   :  { %1086 = vmatprep.mubr.f32.mxu1 %v734_v53 }
 0x6de   :  { %v1109_v54 = vpop.eup %1108 }
 0x6df   :  { %v735_v55 = vmul.f32 %v1109_v54, %v721_v35 }
 0x6e1   :  { %1087 = vmatmul.mubr.f32.vlgmr.msra.gmra.mxu1 %v735_v55 }
 0x7a1   :  { %v1088_v59 = vpop.f32.mrf.mxu1 }
 0x7a2   :  { %v831_v60 = vadd.f32 %v1088_v59, %v888_v58 }
 0x7a3   :  { %v825_v61 = vpop.f32.mrf.mxu1 }
 0x7a4   :  { %v826_v62 = vadd.f32 %v888_v58, %v825_v61  ;;  %v838_v63 = vsel %vm836_vm1, %v831_v60, -1e+30 }
 0x7a5   :  { %841 = vmax.xlane.f32.xlu1 %v838_v63 }
 0x7a6   :  { %v837_v0 = vsel %vm836_vm1, %v826_v62, -1e+30 }
 0x7a7   :  { %839 = vmax.xlane.f32.xlu0 %v837_v0 }
 0x82e   :  { %v842_v1 = vpop.xlane.xlu1 %841 }
 0x82f   :  { %v844_v2 = vsub.f32 %v838_v63, %v842_v1 }
 0x830   :  { %v840_v3 = vpop.xlane.xlu0 %839 }
 0x831   :  { %v847_v4 = vmul.f32 1.442695, %v844_v2  ;;  %v843_v6 = vsub.f32 %v837_v0, %v840_v3 }
 0x833   :  { %1110 = vpow2.f32 %v847_v4  ;;  %v845_v7 = vmul.f32 1.442695, %v843_v6 }
 0x835   :  { %1112 = vpow2.f32 %v845_v7 }
 0x840   :  { %v1111_v8 = vpop.eup %1110 }
 0x841   :  { %851 = vadd.xlane.f32.xlu1 %v1111_v8 }
 0x842   :  { %v1113_v9 = vpop.eup %1112 }
 0x843   :  { %849 = vadd.xlane.f32.xlu0 %v1113_v9 }
 0x8ca   :  { %v852_v10 = vpop.xlane.xlu1 %851 }
 0x8cb   :  { %1114 = vrcp.f32 %v852_v10 }
 0x8cc   :  { %v850_v11 = vpop.xlane.xlu0 %849 }
 0x8cd   :  { %1116 = vrcp.f32 %v850_v11 }
 0x8d8   :  { %v1115_v12 = vpop.eup %1114 }
 0x8d9   :  { %v856_v13 = vmul.f32 %v1115_v12, %v1111_v8 }
 0x8da   :  { %v1117_v14 = vpop.eup %1116 }
 0x8db   :  { %v855_v15 = vmul.f32 %v1117_v14, %v1113_v9  ;;  %858 = vst [vmem:[#allocation13 + $0x8] sm:$0xff] %v856_v13 }
 0x8dd   :  { %857 = vst [vmem:[#allocation13] sm:$0xff] %v855_v15 }
 0x8de   :  { %1249 = shalt.err (!%p1246_p6)
}
 0x8df   :  { %870 = dma.vmem_to_hbm [thread:$0]  %s865_s26, 256, %s1432_s10, [#allocation4], %s1270_s18, %s1270_s18, %s1271_s19  }
 0x8e0   :  { %1266 = dma.done.wait [#allocation4], 256  }
 0x8e1   :  { %1267 = vsyncadd [#allocation4], 4294967040 }
 0x8e2   :  { %874 = vsyncpa [#allocation3], 1 }
 0x8e3   :  { %875 = vsyncpa [#allocation6], 1 }
 0x8e4   :  { %876 = vsyncpa [#allocation9], 1 }
 0x8e5   :  { %877 = vsyncpa [#allocation12], 1 }
 0x8e6   :  { %878 = vsyncpa [#allocation4], 1 }

</bundles_post_ra>
